<compile_context>
chip_gen: v5e
topology: v5e:2x2
jax: 0.10.0
libtpu: 0.0.40
codegen_flags: <defaults>
</compile_context>

<pallas_src>
import functools

import jax
import jax.numpy as jnp
from jax.experimental import pallas as pl
from jax.experimental.pallas import tpu as pltpu


def _ssn_kernel(x_ref, gamma_ref, beta_ref, o_ref, *, eps, n_elems):
    # x_ref block: (N, block_c, L) with L = (F//S)*T (lane-dense last dim).
    x = x_ref[...].astype(jnp.float32)
    # Single fused pass: per-sub-channel sum and sum of squares.
    s1 = jnp.sum(x, axis=(0, 2), keepdims=True)            # (1, block_c, 1)
    s2 = jnp.sum(x * x, axis=(0, 2), keepdims=True)        # (1, block_c, 1)
    mean = s1 * (1.0 / n_elems)
    # torch.Tensor.var defaults to unbiased=True -> divide by (n - 1).
    var = (s2 - n_elems * mean * mean) * (1.0 / (n_elems - 1.0))
    inv_std = jax.lax.rsqrt(var + eps)
    a = gamma_ref[...] * inv_std                            # (1, block_c, 1)
    b = beta_ref[...] - mean * a                            # (1, block_c, 1)
    o_ref[...] = (x * a + b).astype(o_ref.dtype)


def _choose_block_c(CS, per_channel_bytes, target_bytes=4 << 20):
    # Channel block must be a multiple of 8 (sublane constraint) unless it
    # spans all CS sub-channels.
    candidates = sorted({d for d in range(8, CS, 8) if CS % d == 0} | {CS})
    fitting = [d for d in candidates if d * per_channel_bytes <= target_bytes]
    if not fitting:
        # TODO(synk): for very large N*(F//S)*T, split the reduction over a
        # second "arbitrary" grid axis (accumulate sum/sumsq, then normalize).
        return candidates[0]
    # Prefer keeping >=2 grid steps when possible (pipelining / v7x 2-TC
    # sharding); otherwise take the largest block that fits the target.
    multi = [d for d in fitting if CS // d >= 2]
    return max(multi) if multi else max(fitting)


def sub_spectral_norm(x, gamma, beta, S=1, eps=1e-5):
    """x: (N, C, F, T). gamma/beta broadcastable to (1, C*S, 1, 1)."""
    N, C, F, T = x.shape
    assert F % S == 0, "F must be divisible by S"
    CS = C * S
    Fs = F // S
    L = Fs * T
    n_elems = N * L
    assert n_elems > 1, "need at least 2 elements per sub-channel (n-1 var)"

    # Free row-major reshape (no transpose, no extra HBM passes):
    # (N, C, F, T) -> (N, C*S, F//S, T) -> (N, CS, L)
    x_r = x.reshape(N, CS, L)
    gamma_r = jnp.broadcast_to(
        jnp.asarray(gamma, jnp.float32).reshape(-1), (CS,)).reshape(1, CS, 1)
    beta_r = jnp.broadcast_to(
        jnp.asarray(beta, jnp.float32).reshape(-1), (CS,)).reshape(1, CS, 1)

    block_c = _choose_block_c(CS, N * L * x.dtype.itemsize)
    grid_c = CS // block_c

    block_bytes = N * block_c * L * x.dtype.itemsize
    vmem_limit = None
    if 4 * block_bytes > (32 << 20):        # in + out, double buffered
        vmem_limit = min(64 << 20, 4 * block_bytes + (4 << 20))

    kernel = functools.partial(_ssn_kernel, eps=float(eps),
                               n_elems=float(n_elems))

    cost = pl.CostEstimate(
        flops=5 * x.size,
        transcendentals=CS,
        bytes_accessed=2 * x.size * x.dtype.itemsize + 2 * CS * 4,
    )

    out_r = pl.pallas_call(
        kernel,
        out_shape=jax.ShapeDtypeStruct((N, CS, L), x.dtype),
        grid_spec=pltpu.PrefetchScalarGridSpec(
            num_scalar_prefetch=0,
            grid=(grid_c,),
            in_specs=[
                pl.BlockSpec((N, block_c, L), lambda c: (0, c, 0)),
                pl.BlockSpec((1, block_c, 1), lambda c: (0, c, 0)),
                pl.BlockSpec((1, block_c, 1), lambda c: (0, c, 0)),
            ],
            out_specs=pl.BlockSpec((N, block_c, L), lambda c: (0, c, 0)),
        ),
        compiler_params=pltpu.CompilerParams(
            dimension_semantics=("parallel",),
            vmem_limit_bytes=vmem_limit),
        cost_estimate=cost,
    )(x_r, gamma_r, beta_r)

    # Free reshape back: (N, CS, L) -> (N, C, F, T)
    return out_r.reshape(N, C, F, T)


def _reference(x, gamma, beta, S, eps=1e-5):
    # Pure-JAX reference mirroring the PyTorch forward (unbiased variance).
    N, C, F, T = x.shape
    CS, Fs = C * S, F // S
    xr = x.reshape(N, CS, Fs, T)
    mean = xr.mean(axis=(0, 2, 3)).reshape(1, CS, 1, 1)
    n = N * Fs * T
    var = (((xr - mean) ** 2).sum(axis=(0, 2, 3)) / (n - 1)).reshape(1, CS, 1, 1)
    g = jnp.asarray(gamma, jnp.float32).reshape(1, CS, 1, 1)
    b = jnp.asarray(beta, jnp.float32).reshape(1, CS, 1, 1)
    y = g * (xr - mean) / jnp.sqrt(var + eps) + b
    return y.reshape(N, C, F, T)


if __name__ == "__main__":
    # Small shapes consistent with the module: NCHW = (N, C, F, T), S=2.
    N, C, F, T = 2, 4, 16, 16
    S = 2
    CS = C * S

    key = jax.random.PRNGKey(0)
    kx, kg, kb = jax.random.split(key, 3)
    x = jax.random.normal(kx, (N, C, F, T), dtype=jnp.float32)
    gamma = 1.0 + 0.1 * jax.random.normal(kg, (1, CS, 1, 1), dtype=jnp.float32)
    beta = 0.1 * jax.random.normal(kb, (1, CS, 1, 1), dtype=jnp.float32)

    out = sub_spectral_norm(x, gamma, beta, S=S, eps=1e-5)
    out = jax.block_until_ready(out)

    ref = _reference(x, gamma, beta, S)
    assert out.shape == (N, C, F, T)
    assert jnp.allclose(out, ref, atol=1e-5, rtol=1e-5)
    print("KERNEL_OK")
</pallas_src>

<mosaic_0001>
module attributes {stable_mosaic.version = 11 : i64} {
  func.func @_ssn_kernel(%arg0: i32, %arg1: memref<2x8x128xf32, #tpu.memory_space<vmem>>, %arg2: memref<1x8x1xf32, #tpu.memory_space<vmem>>, %arg3: memref<1x8x1xf32, #tpu.memory_space<vmem>>, %arg4: memref<2x8x128xf32, #tpu.memory_space<vmem>>) attributes {dimension_semantics = [#tpu.dimension_semantics<parallel>], iteration_bounds = array<i64: 1>, scalar_prefetch = 0 : i64, scratch_operands = 0 : i64, tpu.core_type = #tpu.core_type<tc>, window_params = [{transform_indices = @transform_0, window_bounds = array<i64: 2, 8, 128>}, {transform_indices = @transform_1, window_bounds = array<i64: 1, 8, 1>}, {transform_indices = @transform_2, window_bounds = array<i64: 1, 8, 1>}, {transform_indices = @transform_3, window_bounds = array<i64: 2, 8, 128>}]} {
    %c0 = arith.constant 0 : index
    %c0_0 = arith.constant 0 : index
    %c0_1 = arith.constant 0 : index
    %0 = vector.load %arg1[%c0, %c0_0, %c0_1] : memref<2x8x128xf32, #tpu.memory_space<vmem>>, vector<2x8x128xf32>
    %cst = arith.constant dense<0.000000e+00> : vector<8xf32>
    %1 = vector.multi_reduction <add>, %0, %cst [0, 2] : vector<2x8x128xf32> to vector<8xf32>
    %2 = vector.shape_cast %1 : vector<8xf32> to vector<1x8x1xf32>
    %3 = arith.mulf %0, %0 : vector<2x8x128xf32>
    %cst_2 = arith.constant dense<0.000000e+00> : vector<8xf32>
    %4 = vector.multi_reduction <add>, %3, %cst_2 [0, 2] : vector<2x8x128xf32> to vector<8xf32>
    %5 = vector.shape_cast %4 : vector<8xf32> to vector<1x8x1xf32>
    %cst_3 = arith.constant 3.906250e-03 : f32
    %6 = vector.broadcast %cst_3 : f32 to vector<1x8x1xf32>
    %7 = arith.mulf %2, %6 : vector<1x8x1xf32>
    %cst_4 = arith.constant 2.560000e+02 : f32
    %8 = vector.broadcast %cst_4 : f32 to vector<1x8x1xf32>
    %9 = arith.mulf %8, %7 : vector<1x8x1xf32>
    %10 = arith.mulf %9, %7 : vector<1x8x1xf32>
    %11 = arith.subf %5, %10 : vector<1x8x1xf32>
    %cst_5 = arith.constant 0.00392156886 : f32
    %12 = vector.broadcast %cst_5 : f32 to vector<1x8x1xf32>
    %13 = arith.mulf %11, %12 : vector<1x8x1xf32>
    %cst_6 = arith.constant 9.99999974E-6 : f32
    %14 = vector.broadcast %cst_6 : f32 to vector<1x8x1xf32>
    %15 = arith.addf %13, %14 : vector<1x8x1xf32>
    %16 = math.rsqrt %15 : vector<1x8x1xf32>
    %c0_7 = arith.constant 0 : index
    %c0_8 = arith.constant 0 : index
    %c0_9 = arith.constant 0 : index
    %17 = vector.load %arg2[%c0_7, %c0_8, %c0_9] : memref<1x8x1xf32, #tpu.memory_space<vmem>>, vector<1x8x1xf32>
    %18 = arith.mulf %17, %16 : vector<1x8x1xf32>
    %c0_10 = arith.constant 0 : index
    %c0_11 = arith.constant 0 : index
    %c0_12 = arith.constant 0 : index
    %19 = vector.load %arg3[%c0_10, %c0_11, %c0_12] : memref<1x8x1xf32, #tpu.memory_space<vmem>>, vector<1x8x1xf32>
    %20 = arith.mulf %7, %18 : vector<1x8x1xf32>
    %21 = arith.subf %19, %20 : vector<1x8x1xf32>
    %22 = vector.broadcast %18 : vector<1x8x1xf32> to vector<2x8x128xf32>
    %23 = arith.mulf %0, %22 : vector<2x8x128xf32>
    %24 = vector.broadcast %21 : vector<1x8x1xf32> to vector<2x8x128xf32>
    %25 = arith.addf %23, %24 : vector<2x8x128xf32>
    %c0_13 = arith.constant 0 : index
    %c0_14 = arith.constant 0 : index
    %c0_15 = arith.constant 0 : index
    %26 = vector.load %arg4[%c0_13, %c0_14, %c0_15] : memref<2x8x128xf32, #tpu.memory_space<vmem>>, vector<2x8x128xf32>
    tpu.vector_store %arg4[%c0_13, %c0_14, %c0_15], %25 {strides = array<i32>} : memref<2x8x128xf32, #tpu.memory_space<vmem>>, vector<2x8x128xf32>,
    return
  }
  func.func @transform_0(%arg0: i32) -> (i32, i32, i32) {
    %c0_i32 = arith.constant 0 : i32
    %c0_i32_0 = arith.constant 0 : i32
    %c0_i32_1 = arith.constant 0 : i32
    return %c0_i32, %arg0, %c0_i32_0 : i32, i32, i32
  }
  func.func @transform_1(%arg0: i32) -> (i32, i32, i32) {
    %c0_i32 = arith.constant 0 : i32
    %c0_i32_0 = arith.constant 0 : i32
    %c0_i32_1 = arith.constant 0 : i32
    return %c0_i32, %arg0, %c0_i32_0 : i32, i32, i32
  }
  func.func @transform_2(%arg0: i32) -> (i32, i32, i32) {
    %c0_i32 = arith.constant 0 : i32
    %c0_i32_0 = arith.constant 0 : i32
    %c0_i32_1 = arith.constant 0 : i32
    return %c0_i32, %arg0, %c0_i32_0 : i32, i32, i32
  }
  func.func @transform_3(%arg0: i32) -> (i32, i32, i32) {
    %c0_i32 = arith.constant 0 : i32
    %c0_i32_0 = arith.constant 0 : i32
    %c0_i32_1 = arith.constant 0 : i32
    return %c0_i32, %arg0, %c0_i32_0 : i32, i32, i32
  }
}

</mosaic_0001>

<bundles_post_ra>
// kernel: tpu_custom_call.1
= control target key start
LH: loop header
LB: loop body
LE: loop exit
PB: predicated region body
PF: predicated region fallthrough
CT: control target
= control target key end

     0   :  { %s153_s0 = inlined_call_operand.vmem [shape: f32[2,8,128], index: 0, kind: input, shape index: {}]   ;;  %s154_s1 = inlined_call_operand.vmem [shape: f32[1,8,1], index: 1, kind: input, shape index: {}]   ;;  %s155_s2 = inlined_call_operand.vmem [shape: f32[1,8,1], index: 2, kind: input, shape index: {}]   ;;  %s156_s3 = inlined_call_operand.hbm [shape: f32[2,8,128], index: 3, kind: output, shape index: {}]  }
   0x1   :  { %v15_v0 = vld [vmem:[%s153_s0] sm:$0xff]  ;;  %v16_v1 = vld [vmem:[%s153_s0 + $0x8] sm:$0xff] }
   0x2   :  { %8 = vsyncpa [#allocation3], 0  ;;  %v17_v2 = vadd.f32 %v16_v1, %v15_v0  ;;  %v20_v3 = vmul.f32 %v15_v0, %v15_v0  ;;  %v21_v4 = vmul.f32 %v16_v1, %v16_v1  ;;  %v114_v6 = vmov 0   ;;  %v41_v21 = vld [vmem:[%s154_s1] sm:$0xff]  ;;  %s115_s19 = smov [#allocation2]   ;;  %s68_s23 = sshll.u32 %s156_s3, 4  ;;  %s69_s23 = int_to_ptr.hbm [resolvable:$true] %s68_s23 }
   0x3   :  { %84 = vset.pattern.permute.xlu1 %v114_v6  ;;  %85 = vset.pattern.permute.xlu0 %v114_v6  ;;  %v43_v25 = vld [vmem:[%s155_s2] sm:$0xff]  ;;  %s66_s20 = sshll.u32 %s115_s19, 4  ;;  %s116_s1 = smov 128   ;;  %s67_s20 = int_to_ptr.vmem [resolvable:$true] %s66_s20 }
   0x4   :  { %18 = vadd.xlane.f32.xlu0 %v17_v2  ;;  %v22_v5 = vadd.f32 %v21_v4, %v20_v3  ;;  %s117_s2 = smov 8  }
   0xc   :  { %23 = vadd.xlane.f32.xlu0 %v22_v5 }
  0x77   :  { %v19_v7 = vpop.xlane.xlu0 %18 }
  0x78   :  { %v25_v8 = vmul.f32 0.00390625, %v19_v7 }
  0x7a   :  { %v26_v9 = vmul.f32 256.0, %v25_v8 }
  0x7c   :  { %v27_v10 = vmul.f32 %v26_v9, %v25_v8 }
  0x7f   :  { %v24_v11 = vpop.xlane.xlu0 %23 }
  0x80   :  { %v28_v12 = vsub.f32 %v24_v11, %v27_v10 }
  0x82   :  { %v29_v13 = vmul.f32 0.003921569, %v28_v12 }
  0x84   :  { %v30_v14 = vadd.f32 1e-05, %v29_v13 }
  0x86   :  { %86 = vrsqrt.f32 %v30_v14  ;;  %vm37_vm1 = vweird.f32 %v30_v14 }
  0x8c   :  { %v87_v15 = vpop.eup %86 }
  0x8d   :  { %v32_v16 = vmul.f32 %v87_v15, %v30_v14  ;;  %vm38_vm0 = vweird.f32 %v87_v15 }
  0x8e   :  { %vm39_vm2 = vmor %vm37_vm1, %vm38_vm0 }
  0x8f   :  { %v33_v17 = vmul.f32 %v87_v15, %v32_v16 }
  0x91   :  { %v34_v18 = vmul.f32 0.5, %v33_v17 }
  0x93   :  { %v35_v19 = vsub.f32 1.5, %v34_v18 }
  0x95   :  { %v36_v20 = vmul.f32 %v87_v15, %v35_v19 }
  0x97   :  { %v40_v22 = vsel %vm39_vm2, %v87_v15, %v36_v20 }
  0x98   :  { %v42_v23 = vmul.f32 %v41_v21, %v40_v22 }
  0x9a   :  { %48 = vperm.xlu1 %84, %v42_v23   ;;  %v44_v24 = vmul.f32 %v42_v23, %v25_v8 }
  0x9c   :  { %v45_v26 = vsub.f32 %v43_v25, %v44_v24 }
  0xa2   :  { %55 = vperm.xlu1 %84, %v45_v26  }
 0x10c   :  { %v49_v27 = vpop.permute.xlu1 %48 }
 0x10d   :  { %v51_v28 = vmul.f32 %v49_v27, %v15_v0  ;;  %v52_v29 = vmul.f32 %v49_v27, %v16_v1 }
 0x114   :  { %v56_v30 = vpop.permute.xlu1 %55 }
 0x115   :  { %v58_v31 = vadd.f32 %v56_v30, %v51_v28  ;;  %v59_v32 = vadd.f32 %v56_v30, %v52_v29 }
 0x117   :  { %60 = vst [vmem:[#allocation2] sm:$0xff] %v58_v31 }
 0x118   :  { %61 = vst [vmem:[#allocation2 + $0x8] sm:$0xff] %v59_v32 }
 0x119   :  { %74 = dma.vmem_to_hbm [thread:$0]  %s67_s20, 256, %s69_s23, [#allocation3], %s116_s1, %s116_s1, %s117_s2  }
 0x11a   :  { %112 = dma.done.wait [#allocation3], 256  }
 0x11b   :  { %113 = vsyncadd [#allocation3], 4294967040 }
 0x11c   :  { %79 = vsyncpa [#allocation3], 1 }

</bundles_post_ra>
